<compile_context>
chip_gen: v7x
topology: tpu7x:2x2x1
jax: 0.10.0
libtpu: 0.0.40
codegen_flags: <defaults>
</compile_context>

<pallas_src>
import functools
import numpy as np
import jax
import jax.numpy as jnp
from jax import lax
from jax.experimental import pallas as pl
from jax.experimental.pallas import tpu as pltpu


def _round_up(x, m):
    return ((x + m - 1) // m) * m


# ----------------------------------------------------------------------------
# Kernel 1: folded weight-predictor matvec.
#   qp[:, 0] = enc . v_enc,  qp[:, 1] = enc . v_hist,  nz = (sum|enc| != 0)
# The relu/clip and window-mean combination happen on [B, T] scalars in XLA.
# ----------------------------------------------------------------------------
def _weight_matvec_kernel(enc_ref, v2_ref, qp_ref, nz_ref):
    x = enc_ref[...]
    qp_ref[...] = jnp.dot(x, v2_ref[...], preferred_element_type=jnp.float32)
    nz_ref[...] = (jnp.sum(jnp.abs(x), axis=1, keepdims=True) != 0.0).astype(
        jnp.float32)


def cif_weight_matvec(enc_flat, v2, *, row_tile=1024):
    n, h = enc_flat.shape
    # Cap row tile so double-buffered (rt, H) inputs stay ~<= 8 MiB (v7x-safe).
    max_rt = max(8, (8 * 1024 * 1024) // max(1, 2 * h * 4))
    rt = min(row_tile, max_rt)
    rt = max(8, (rt // 8) * 8)
    if n <= rt:
        rt = _round_up(n, 8)
    n_pad = _round_up(n, rt)
    if n_pad != n:
        enc_flat = jnp.pad(enc_flat, ((0, n_pad - n), (0, 0)))

    qp, nz = pl.pallas_call(
        _weight_matvec_kernel,
        out_shape=(jax.ShapeDtypeStruct((n_pad, 2), jnp.float32),
                   jax.ShapeDtypeStruct((n_pad, 1), jnp.float32)),
        grid=(n_pad // rt,),
        in_specs=[
            pl.BlockSpec((rt, h), lambda i: (i, 0)),
            pl.BlockSpec((h, 2), lambda i: (0, 0)),
        ],
        out_specs=(pl.BlockSpec((rt, 2), lambda i: (i, 0)),
                   pl.BlockSpec((rt, 1), lambda i: (i, 0))),
        compiler_params=pltpu.CompilerParams(
            dimension_semantics=("parallel",),
            vmem_limit_bytes=32 * 1024 * 1024),
        cost_estimate=pl.CostEstimate(
            flops=6 * n_pad * h,
            transcendentals=0,
            bytes_accessed=(n_pad * h + 2 * h + 3 * n_pad) * 4),
    )(enc_flat, v2)
    return qp[:n, 0], qp[:n, 1], nz[:n, 0]


# ----------------------------------------------------------------------------
# Kernel 2: sequential CIF integrate-and-fire recurrence, T-chunked.
# Inputs are time-major [T_pad, B_pad, *]; each step works on a dense
# [bt, H] tile.  Carry (prev_w, prev_s) lives in VMEM scratch across chunks.
# wk column 0 = (scaled, padding-masked) weight, column 1 = keep mask.
# ----------------------------------------------------------------------------
def _cif_scan_kernel(enc_ref, wk_ref, fired_ref, flag_ref, tail_ref,
                     prev_w_sc, prev_s_sc,
                     *, threshold, t_real, t_chunk, unroll):
    chunk = pl.program_id(1)

    @pl.when(chunk == 0)
    def _():
        prev_w_sc[...] = jnp.zeros_like(prev_w_sc)
        prev_s_sc[...] = enc_ref[0]     # reference t==0: prev_state = enc[:, 0, :]

    t0 = chunk * t_chunk

    def body(tau, carry):
        prev_w, prev_s = carry
        x_t = enc_ref[tau]              # [bt, H]
        wk = wk_ref[tau]                # [bt, 2]
        w_t = wk[:, 0:1]
        kp = wk[:, 1:2]
        fired = (prev_w + w_t) > threshold
        remained = threshold - prev_w
        new_w = jnp.where(fired, w_t - remained, w_t + prev_w)
        acc_alt = prev_s + (1.0 - w_t) * x_t
        new_s = jnp.where(fired, x_t, acc_alt)
        fired_ref[tau] = jnp.where(fired, acc_alt, 0.0) * kp
        flag_ref[tau] = jnp.where(fired, 1.0, 0.0)
        # Steps in the T-padding region must not advance the carry.
        valid = (t0 + tau) < t_real
        new_w = jnp.where(valid, new_w, prev_w)
        new_s = jnp.where(valid, new_s, prev_s)
        return new_w, new_s

    prev_w, prev_s = lax.fori_loop(0, t_chunk, body,
                                   (prev_w_sc[...], prev_s_sc[...]),
                                   unroll=unroll)
    prev_w_sc[...] = prev_w
    prev_s_sc[...] = prev_s
    tail_ref[...] = prev_s              # resident accumulator; last write wins


def cif_scan(enc, weight_bt, keep_bt, threshold, *, batch_tile=8,
             time_chunk=128):
    # enc: [B, T, H] f32; weight_bt / keep_bt: [B, T] f32
    b, t, h = enc.shape
    bt = batch_tile
    b_pad = _round_up(max(b, bt), bt)
    tc = min(time_chunk, t)
    t_pad = _round_up(t, tc)

    enc_p = jnp.pad(enc, ((0, b_pad - b), (0, t_pad - t), (0, 0)))
    wk = jnp.stack([weight_bt, keep_bt], axis=-1)              # [B, T, 2]
    wk_p = jnp.pad(wk, ((0, b_pad - b), (0, t_pad - t), (0, 0)))

    enc_s = jnp.transpose(enc_p, (1, 0, 2))                    # [T_pad, B_pad, H]
    wk_s = jnp.transpose(wk_p, (1, 0, 2))                      # [T_pad, B_pad, 2]

    unroll = min(tc, 8 if h <= 256 else 4)
    kernel = functools.partial(_cif_scan_kernel, threshold=threshold,
                               t_real=t, t_chunk=tc, unroll=unroll)
    nb, nc = b_pad // bt, t_pad // tc

    fired_s, flag_s, tail_s = pl.pallas_call(
        kernel,
        out_shape=(jax.ShapeDtypeStruct((t_pad, b_pad, h), jnp.float32),
                   jax.ShapeDtypeStruct((t_pad, b_pad, 1), jnp.float32),
                   jax.ShapeDtypeStruct((b_pad, h), jnp.float32)),
        grid=(nb, nc),
        in_specs=[
            pl.BlockSpec((tc, bt, h), lambda ib, ic: (ic, ib, 0)),
            pl.BlockSpec((tc, bt, 2), lambda ib, ic: (ic, ib, 0)),
        ],
        out_specs=(pl.BlockSpec((tc, bt, h), lambda ib, ic: (ic, ib, 0)),
                   pl.BlockSpec((tc, bt, 1), lambda ib, ic: (ic, ib, 0)),
                   pl.BlockSpec((bt, h), lambda ib, ic: (ib, 0))),
        scratch_shapes=[pltpu.VMEM((bt, 1), jnp.float32),
                        pltpu.VMEM((bt, h), jnp.float32)],
        compiler_params=pltpu.CompilerParams(
            dimension_semantics=("parallel", "arbitrary"),
            vmem_limit_bytes=48 * 1024 * 1024),
        cost_estimate=pl.CostEstimate(
            flops=10 * t_pad * b_pad * h,
            transcendentals=0,
            bytes_accessed=(2 * t_pad * b_pad * h + 3 * t_pad * b_pad
                            + b_pad * h) * 4),
    )(enc_s, wk_s)

    fired_main = jnp.transpose(fired_s, (1, 0, 2))[:b, :t]     # [B, T, H]
    fired_flag = jnp.transpose(flag_s, (1, 0, 2))[:b, :t]      # [B, T, 1]
    tail = tail_s[:b]                                          # [B, H]
    return fired_main, fired_flag, tail


# ----------------------------------------------------------------------------
# Full forward (glue in JAX / numpy, hot path in the two Pallas kernels above)
# ----------------------------------------------------------------------------
def cif_forward(params, encoder_outputs, mask, is_training,
                cif_weight_threshold=1.0, max_history=10, relu_threshold=1.0,
                using_scaling=True, normalize_scalar=1.0):
    enc = encoder_outputs.astype(jnp.float32)
    B, T, H = enc.shape

    # Fold Linear(2H->2H) o Linear(2H->1); valid because nonlinear_act is None
    # (default in the reference).  With info = [enc, enc - history]:
    #   weight_pre = enc @ (v[:H] + v[H:]) - history @ v[H:] + c
    v = params['w1'] @ params['w2']                            # [2H, 1]
    c = (params['b1'] @ params['w2'] + params['b2'])[0, 0]     # scalar
    v_enc = v[:H] + v[H:]
    v_hist = v[H:]
    v2 = jnp.concatenate([v_enc, v_hist], axis=1)              # [H, 2]

    q_flat, p_flat, nz_flat = cif_weight_matvec(enc.reshape(B * T, H), v2)
    q = q_flat.reshape(B, T)
    p = p_flat.reshape(B, T)
    nz = nz_flat.reshape(B, T)

    first_padding_pos = jnp.sum(nz.astype(jnp.int32), axis=1)  # [B]

    # History contribution folded through v_hist: window mean of p via prefix
    # sums on [B, T] scalars (the [B,T,H] history tensor is never built).
    P = jnp.concatenate([jnp.zeros((B, 1), jnp.float32),
                         jnp.cumsum(p, axis=1)], axis=1)       # [B, T+1]
    t_idx = jnp.arange(T)
    start = jnp.maximum(0, t_idx - max_history)
    win_len = jnp.maximum((t_idx - start).astype(jnp.float32), 1.0)
    hist_p = (P[:, :T] - jnp.take(P, start, axis=1)) / win_len[None, :]
    hist_p = hist_p.at[:, 0].set(p[:, 0])                      # t == 0 special case

    weight = q - hist_p + c
    weight = jnp.minimum(jnp.maximum(weight, 0.0), relu_threshold)  # crelu + clip
    ori_weight = weight
    sum_a = weight.sum(1)

    if is_training and using_scaling and (mask is not None):
        N = mask[:, :, 0].sum(-1) - 1.0
        scale = N / jnp.maximum(sum_a, 1e-8)
        scale = jnp.where(sum_a == 0, jnp.zeros_like(sum_a), scale)
        weight = scale[:, None] * weight

    # Padding mask: weight zeroed for t > first_padding_pos (reference uses '>'),
    # and fired states zeroed there too (fused into the scan kernel via `keep`).
    keep = (t_idx[None, :] <= first_padding_pos[:, None]).astype(jnp.float32)
    w_masked = weight * keep

    fired_main, fired_flag, tail = cif_scan(enc, w_masked, keep,
                                            float(cif_weight_threshold))

    fired_full = jnp.concatenate([fired_main, tail[:, None, :]], axis=1)  # [B,T+1,H]
    fired_marks_dev = (jnp.sum(jnp.abs(fired_full), -1) != 0.0).astype(jnp.int32)

    # TODO(synk): the fired-frame gather/pad has a data-dependent output length;
    # it stays on host with numpy, matching the reference python loop.
    fs, fm = jax.device_get((fired_full, fired_marks_dev))
    fs = np.asarray(fs)
    fm = np.asarray(fm)
    fired_utt_length = fm.sum(-1)
    fired_max_length = int(fired_utt_length.max())
    cif_outputs = np.zeros((B, fired_max_length, H), np.float32)
    for j in range(B):
        rows = fs[j][fm[j] == 1]
        cif_outputs[j, :rows.shape[0], :] = rows
    not_padding_after_cif = (np.sum(np.abs(cif_outputs), -1) != 0.0).astype(np.int32)
    norm = np.linalg.norm(cif_outputs, axis=-1, keepdims=True)
    cif_outputs = normalize_scalar * cif_outputs / np.maximum(norm, 1e-12)

    return (jnp.asarray(cif_outputs), ori_weight, fired_flag,
            jnp.asarray(not_padding_after_cif), sum_a)


if __name__ == "__main__":
    key = jax.random.PRNGKey(0)
    B, T, H = 2, 8, 32          # batch, seq, encoder_out_dim
    k1, k2, k3 = jax.random.split(key, 3)

    encoder_outputs = jax.random.normal(k1, (B, T, H), jnp.float32)
    mask = jnp.ones((B, T, 1), jnp.float32)

    # deterministic synthetic parameters (shapes from nn.Linear(2H,2H)/(2H,1)),
    # stored as [in, out] so the fold is x @ W + b directly.
    params = {
        'w1': 0.1 * jax.random.normal(k2, (2 * H, 2 * H), jnp.float32),
        'b1': jnp.full((1, 2 * H), 0.05, jnp.float32),
        'w2': 0.1 * jax.random.normal(k3, (2 * H, 1), jnp.float32),
        'b2': jnp.full((1, 1), 0.05, jnp.float32),
    }

    outs = cif_forward(params, encoder_outputs, mask, is_training=True,
                       max_history=4)
    for o in outs:
        jax.block_until_ready(o)
    print("KERNEL_OK")
</pallas_src>

<mosaic_0001>
module attributes {stable_mosaic.version = 11 : i64} {
  func.func @_weight_matvec_kernel(%arg0: i32, %arg1: memref<16x32xf32, #tpu.memory_space<vmem>>, %arg2: memref<32x2xf32, #tpu.memory_space<vmem>>, %arg3: memref<16x2xf32, #tpu.memory_space<vmem>>, %arg4: memref<16x1xf32, #tpu.memory_space<vmem>>) attributes {dimension_semantics = [#tpu.dimension_semantics<parallel>], iteration_bounds = array<i64: 1>, scalar_prefetch = 0 : i64, scratch_operands = 0 : i64, tpu.core_type = #tpu.core_type<tc>, window_params = [{transform_indices = @transform_0, window_bounds = array<i64: 16, 32>}, {pipeline_mode = #tpu.pipeline_mode<synchronous>, transform_indices = @transform_1, window_bounds = array<i64: 32, 2>}, {transform_indices = @transform_2, window_bounds = array<i64: 16, 2>}, {transform_indices = @transform_3, window_bounds = array<i64: 16, 1>}]} {
    %c0 = arith.constant 0 : index
    %c0_0 = arith.constant 0 : index
    %0 = vector.load %arg1[%c0, %c0_0] : memref<16x32xf32, #tpu.memory_space<vmem>>, vector<16x32xf32>
    %c0_1 = arith.constant 0 : index
    %c0_2 = arith.constant 0 : index
    %1 = vector.load %arg2[%c0_1, %c0_2] : memref<32x2xf32, #tpu.memory_space<vmem>>, vector<32x2xf32>
    %cst = arith.constant dense<0.000000e+00> : vector<16x2xf32>
    %2 = tpu.matmul %0, %1, %cst {dimension_numbers = #tpu.dot_dimension_numbers<[1], [0], [0], [1], [0, 0, 1, 1], [], []>} : vector<16x32xf32>, vector<32x2xf32>, vector<16x2xf32> -> vector<16x2xf32>
    %c0_3 = arith.constant 0 : index
    %c0_4 = arith.constant 0 : index
    %3 = vector.load %arg3[%c0_3, %c0_4] : memref<16x2xf32, #tpu.memory_space<vmem>>, vector<16x2xf32>
    tpu.vector_store %arg3[%c0_3, %c0_4], %2 {strides = array<i32>} : memref<16x2xf32, #tpu.memory_space<vmem>>, vector<16x2xf32>,
    %4 = math.absf %0 : vector<16x32xf32>
    %cst_5 = arith.constant dense<0.000000e+00> : vector<16xf32>
    %5 = vector.multi_reduction <add>, %4, %cst_5 [1] : vector<16x32xf32> to vector<16xf32>
    %6 = vector.shape_cast %5 : vector<16xf32> to vector<16x1xf32>
    %cst_6 = arith.constant 0.000000e+00 : f32
    %7 = vector.broadcast %cst_6 : f32 to vector<16x1xf32>
    %8 = arith.cmpf one, %6, %7 : vector<16x1xf32>
    %9 = arith.extui %8 : vector<16x1xi1> to vector<16x1xi32>
    %10 = arith.sitofp %9 : vector<16x1xi32> to vector<16x1xf32>
    %c0_7 = arith.constant 0 : index
    %c0_8 = arith.constant 0 : index
    %11 = vector.load %arg4[%c0_7, %c0_8] : memref<16x1xf32, #tpu.memory_space<vmem>>, vector<16x1xf32>
    tpu.vector_store %arg4[%c0_7, %c0_8], %10 {strides = array<i32>} : memref<16x1xf32, #tpu.memory_space<vmem>>, vector<16x1xf32>,
    return
  }
  func.func @transform_0(%arg0: i32) -> (i32, i32) {
    %c0_i32 = arith.constant 0 : i32
    %c0_i32_0 = arith.constant 0 : i32
    return %arg0, %c0_i32 : i32, i32
  }
  func.func @transform_1(%arg0: i32) -> (i32, i32) {
    %c0_i32 = arith.constant 0 : i32
    %c0_i32_0 = arith.constant 0 : i32
    %c0_i32_1 = arith.constant 0 : i32
    return %c0_i32, %c0_i32_0 : i32, i32
  }
  func.func @transform_2(%arg0: i32) -> (i32, i32) {
    %c0_i32 = arith.constant 0 : i32
    %c0_i32_0 = arith.constant 0 : i32
    return %arg0, %c0_i32 : i32, i32
  }
  func.func @transform_3(%arg0: i32) -> (i32, i32) {
    %c0_i32 = arith.constant 0 : i32
    %c0_i32_0 = arith.constant 0 : i32
    return %arg0, %c0_i32 : i32, i32
  }
}

</mosaic_0001>

<bundles_post_ra>
// kernel: tpu_custom_call.1
= control target key start
LH: loop header
LB: loop body
LE: loop exit
PB: predicated region body
PF: predicated region fallthrough
CT: control target
= control target key end

     0   :  { %vm19_vm0 = vcmask 261120   ;;  %vm118_vm1 = vcmask 7168   ;;  %v159_v13 = vmov 0.0   ;;  %vm101_vm4 = vcmask 15360   ;;  %s214_s1 = inlined_call_operand.vmem [shape: f32[32,2], index: 1, kind: input, shape index: {}]   ;;  %s215_s0 = inlined_call_operand.vmem [shape: f32[16,32], index: 0, kind: input, shape index: {}]   ;;  %s216_s3 = inlined_call_operand.vmem [shape: f32[16,1], index: 3, kind: output, shape index: {1}]   ;;  %s217_s2 = inlined_call_operand.vmem [shape: f32[16,2], index: 2, kind: output, shape index: {0}]  }
   0x1   :  { %v15_v0 = vld [vmem:[%s214_s1] sm:$0xff]  ;;  %v16_v1 = vld [vmem:[%s214_s1 + $0x8] sm:$0xff]  ;;  %v17_v2 = vld [vmem:[%s214_s1 + $0x10] sm:$0xff] }
   0x2   :  { %v150_v3 = vpack.c.bf16 %v16_v1, %v15_v0  ;;  %v18_v4 = vld [vmem:[%s214_s1 + $0x18] sm:$0xff]  ;;  %v13_v5 = vld [vmem:[%s215_s0] sm:$0xff]  ;;  %v14_v6 = vld [vmem:[%s215_s0 + $0x8] sm:$0xff] }
   0x3   :  { %v154_v7 = vpack.c.bf16 %v18_v4, %v17_v2  ;;  %147 = vmatprep.mubr.msk.f32.mxu0 %vm19_vm0, %v13_v5  ;;  %v104_v8 = vand.u32 2147483647, %v13_v5  ;;  %v105_v9 = vand.u32 2147483647, %v14_v6 }
   0x4   :  { %151 = vmatprep.subr.bf16.mxu0 %v150_v3 }
   0x5   :  { %153 = vmatpush3.bf16.msra.mxu0 %v150_v3  ;;  %v106_v10 = vsel %vm19_vm0, %v104_v8, 0.0  ;;  %v109_v11 = vsel %vm19_vm0, %v105_v9, 0.0 }
   0x6   :  { %155 = vmatprep.subr.bf16.mxu0 %v154_v7  ;;  %107 = vadd.xlane.f32.xlu0 %v106_v10 }
   0x9   :  { %157 = vmatpush3.bf16.msra.mxu0 %v154_v7 }
   0xa   :  { %110 = vadd.xlane.f32.xlu0 %v109_v11 }
   0xc   :  { %148 = vmatmul.mubr.msk.f32.vlgmr.msra.gmra.mrb[0].mxu0 %vm19_vm0, %v14_v6 }
  0x93   :  { %v108_v12 = vpop.xlane.xlu0 %107 }
  0x94   :  { %vm112_vm2 = vcmp.ne.f32.partialorder %v108_v12, 0.0 }
  0x95   :  { %v131_v14 = vsel %vm112_vm2, 1.0, %v159_v13 }
  0x96   :  { %119 = vst.msk [vmem:[%s216_s3] sm:$0xff] %vm118_vm1, %v131_v14 }
  0x97   :  { %v111_v15 = vpop.xlane.xlu0 %110 }
  0x98   :  { %vm113_vm3 = vcmp.ne.f32.partialorder %v111_v15, 0.0 }
  0x99   :  { %v132_v16 = vsel %vm113_vm3, 1.0, %v159_v13 }
  0x9a   :  { %120 = vst.msk [vmem:[%s216_s3 + $0x8] sm:$0xff] %vm118_vm1, %v132_v16 }
  0xdf   :  { %v149_v17 = vpop.f32.mrb[0].mxu0 }
  0xe0   :  { %103 = vst.msk [vmem:[%s217_s2 + $0x8] sm:$0xff] %vm101_vm4, %v149_v17  ;;  %v92_v18 = vpop.f32.mrb[1].mxu0 }
  0xe1   :  { %102 = vst.msk [vmem:[%s217_s2] sm:$0xff] %vm101_vm4, %v92_v18 }

</bundles_post_ra>
